<compile_context>
chip_gen: v7x
topology: tpu7x:2x2x1
jax: 0.10.0
libtpu: 0.0.40
codegen_flags: <defaults>
</compile_context>

<pallas_src>
import jax
import jax.numpy as jnp
from jax.experimental import pallas as pl
from jax.experimental.pallas import tpu as pltpu


def _identity_kernel(x_ref, o_ref):
    # Pure pass-through of the current (tile_rows, cols) VMEM tile.
    o_ref[...] = x_ref[...]


def _sublane_multiple(dtype) -> int:
    """Native second-to-last tile multiple: 8 (f32), 16 (bf16), 32 (int8/fp8)."""
    itemsize = jnp.dtype(dtype).itemsize
    return max(8, 32 // max(itemsize, 1))


def _vmem_capacity_bytes() -> int:
    """Physical VMEM per TensorCore; conservative (v7x) fallback if unknown."""
    try:
        return int(pltpu.get_tpu_info().vmem_capacity_bytes)
    except Exception:
        return 64 * 1024 * 1024


def _budget_for_vmem(vmem_bytes: int):
    """(per_buffer_tile_bytes, vmem_limit_bytes) sized per TPU generation."""
    if vmem_bytes >= 128 * 1024 * 1024:      # v5e / v6e
        return 16 * 1024 * 1024, 96 * 1024 * 1024
    return 8 * 1024 * 1024, 48 * 1024 * 1024  # v7x (64 MiB VMEM/TC)


def _choose_layout(n: int, sub: int, max_cols: int = 8192):
    """Factor the flat size into a lane-dense (rows, cols) layout.

    Returns (rows, cols, pad_elems) with cols a multiple of 128 (unmasked vst)
    unless the array is tiny (<128 elems), in which case a single full-extent
    block is used (exempt from the (8,128) rule).  Sizes with no 128-multiple
    divisor are padded instead of becoming one giant VMEM block.
    """
    if n < 128:
        return 1, n, 0
    best = 0
    c = 128
    while c <= min(n, max_cols):
        if n % c == 0:
            best = c
        c += 128
    if best:
        return n // best, best, 0
    # Awkward sizes: pad flat length to a multiple of (512 * sub) -> cols=512,
    # rows a multiple of the sublane group.  Padding cost is bounded and keeps
    # every block well inside the tile budget.
    cols = 512
    chunk = cols * sub
    padded = -(-n // chunk) * chunk
    return padded // cols, cols, padded - n


@jax.jit
def pallas_passthrough(x):
    """Pallas pipeline a subclass would fill with real compute (here: copy)."""
    orig_shape = x.shape
    if x.ndim == 0 or x.size == 0:
        return x

    n = x.size
    itemsize = jnp.dtype(x.dtype).itemsize
    sub = _sublane_multiple(x.dtype)
    rows, cols, pad = _choose_layout(n, sub)

    flat = x.reshape(-1)
    if pad:
        flat = jnp.pad(flat, (0, pad))
    x2 = flat.reshape(rows, cols)

    per_buf_bytes, vmem_limit = _budget_for_vmem(_vmem_capacity_bytes())
    row_bytes = cols * itemsize
    tile_rows = max(sub, (per_buf_bytes // max(row_bytes, 1)) // sub * sub)
    tile_rows = min(tile_rows, rows)
    # Keep at least 2 parallel grid steps for mid-sized inputs so both v7x
    # TensorCores can issue DMAs (harmless on single-TC v5e/v6e).
    if tile_rows >= rows and rows > sub:
        half = -(-rows // 2)
        tile_rows = min(rows, max(sub, -(-half // sub) * sub))

    grid_rows = pl.cdiv(rows, tile_rows)

    y2 = pl.pallas_call(
        _identity_kernel,
        out_shape=jax.ShapeDtypeStruct((rows, cols), x.dtype),
        grid=(grid_rows,),
        in_specs=[pl.BlockSpec((tile_rows, cols), lambda i: (i, 0))],
        out_specs=pl.BlockSpec((tile_rows, cols), lambda i: (i, 0)),
        compiler_params=pltpu.CompilerParams(
            dimension_semantics=("parallel",),
            vmem_limit_bytes=vmem_limit,
        ),
    )(x2)

    out = y2.reshape(-1)
    if pad:
        out = out[:n]
    return out.reshape(orig_shape)


def base_model_forward(x):
    """Forward of the abstract BaseModel.

    Per the perf review, a true identity should never launch a kernel: every
    byte moved would be 2x HBM traffic for zero compute.  Return x directly;
    subclasses with real compute use the `pallas_passthrough` structure.
    """
    return x


if __name__ == "__main__":
    key = jax.random.PRNGKey(0)
    # Small deterministic input shaped like typical activations flowing through
    # a BaseModel subclass: (batch=2, channels=4, height=16, width=32) f32.
    x = jax.random.normal(key, (2, 4, 16, 32), dtype=jnp.float32)

    # Fast path: the abstract forward is a zero-cost pass-through.
    y_fast = jax.block_until_ready(base_model_forward(x))
    assert bool(jnp.array_equal(y_fast, x))

    # Kernel path (lane-dense, zero-copy layout: 4096 % 128 == 0).
    y = jax.block_until_ready(pallas_passthrough(x))
    assert y.shape == x.shape and y.dtype == x.dtype
    assert bool(jnp.array_equal(y, x)), "identity kernel mismatch"

    # Exercise the padded fallback path (size 259 has no 128-multiple factor).
    x_odd = jax.random.normal(jax.random.PRNGKey(1), (7, 37), dtype=jnp.float32)
    y_odd = jax.block_until_ready(pallas_passthrough(x_odd))
    assert bool(jnp.array_equal(y_odd, x_odd)), "padded fallback mismatch"

    print("KERNEL_OK")
</pallas_src>

<mosaic_0001>
module attributes {stable_mosaic.version = 11 : i64} {
  func.func @_identity_kernel(%arg0: i32, %arg1: memref<1x4096xf32, #tpu.memory_space<vmem>>, %arg2: memref<1x4096xf32, #tpu.memory_space<vmem>>) attributes {dimension_semantics = [#tpu.dimension_semantics<parallel>], iteration_bounds = array<i64: 1>, scalar_prefetch = 0 : i64, scratch_operands = 0 : i64, tpu.core_type = #tpu.core_type<tc>, window_params = [{transform_indices = @transform_0, window_bounds = array<i64: 1, 4096>}, {transform_indices = @transform_1, window_bounds = array<i64: 1, 4096>}]} {
    %c0 = arith.constant 0 : index
    %c0_0 = arith.constant 0 : index
    %0 = vector.load %arg1[%c0, %c0_0] : memref<1x4096xf32, #tpu.memory_space<vmem>>, vector<1x4096xf32>
    %c0_1 = arith.constant 0 : index
    %c0_2 = arith.constant 0 : index
    %1 = vector.load %arg2[%c0_1, %c0_2] : memref<1x4096xf32, #tpu.memory_space<vmem>>, vector<1x4096xf32>
    tpu.vector_store %arg2[%c0_1, %c0_2], %0 {strides = array<i32>} : memref<1x4096xf32, #tpu.memory_space<vmem>>, vector<1x4096xf32>,
    return
  }
  func.func @transform_0(%arg0: i32) -> (i32, i32) {
    %c0_i32 = arith.constant 0 : i32
    %c0_i32_0 = arith.constant 0 : i32
    return %arg0, %c0_i32 : i32, i32
  }
  func.func @transform_1(%arg0: i32) -> (i32, i32) {
    %c0_i32 = arith.constant 0 : i32
    %c0_i32_0 = arith.constant 0 : i32
    return %arg0, %c0_i32 : i32, i32
  }
}

</mosaic_0001>

<bundles_post_ra>
// kernel: pallas_passthrough.1
= control target key start
LH: loop header
LB: loop body
LE: loop exit
PB: predicated region body
PF: predicated region fallthrough
CT: control target
= control target key end

     0   :  { %s54_s0 = inlined_call_operand.vmem [shape: f32[1,4096], index: 0, kind: input, shape index: {}]   ;;  %s55_s1 = inlined_call_operand.vmem [shape: f32[1,4096], index: 1, kind: output, shape index: {}]  }
   0x1   :  { %v8_v0 = vld [vmem:[%s54_s0] sm:$0xff]  ;;  %v9_v1 = vld [vmem:[%s54_s0 + $0x8] sm:$0xff]  ;;  %v10_v2 = vld [vmem:[%s54_s0 + $0x10] sm:$0xff] }
   0x2   :  { %12 = vst [vmem:[%s55_s1] sm:$0xff] %v8_v0  ;;  %13 = vst [vmem:[%s55_s1 + $0x8] sm:$0xff] %v9_v1  ;;  %v11_v3 = vld [vmem:[%s54_s0 + $0x18] sm:$0xff] }
   0x3   :  { %14 = vst [vmem:[%s55_s1 + $0x10] sm:$0xff] %v10_v2  ;;  %15 = vst [vmem:[%s55_s1 + $0x18] sm:$0xff] %v11_v3 }

</bundles_post_ra>
